<compile_context>
chip_gen: v6e
topology: v6e:2x2x1
jax: 0.10.0
libtpu: 0.0.40
codegen_flags: <defaults>
</compile_context>

<pallas_src>
import functools

import jax
import jax.numpy as jnp
from jax.experimental import pallas as pl
from jax.experimental.pallas import tpu as pltpu


def _decoder_kernel(zsum_ref, w_ref, b_ref, o_ref, *, apply_sigmoid):
    # zsum_ref: (C, TE)  summed endpoint features, edges on lanes (lane-dense)
    # w_ref:    (C, 1)   Linear weight as a column (VMEM resident)
    # b_ref:    (1, 1)   scalar bias in SMEM
    # o_ref:    (1, TE)  lane-dense output row
    weighted = zsum_ref[...] * w_ref[...]                       # VPU broadcast mul
    logits = jnp.sum(weighted, axis=0, keepdims=True) + b_ref[0, 0]  # XLU sublane reduce
    o_ref[...] = jax.nn.sigmoid(logits) if apply_sigmoid else logits


def logistic_decoder_forward(z, edge_index, weight, bias, *, sigmoid=True,
                             tile_e=1024):
    """LogisticDecoder.forward.

    z:          (N, C) float32 node embeddings
    edge_index: (2, E) int32
    weight:     (1, C) float32  (nn.Linear(C, 1).weight layout)
    bias:       (1,)   float32  (nn.Linear(C, 1).bias)
    returns:    (E, 1) float32
    """
    N, C = z.shape
    E = edge_index.shape[1]

    # Lane-dense tiling: pad E up to a multiple of tile_e (>= 128).
    tile_e = max(128, int(tile_e))
    e_pad = ((E + tile_e - 1) // tile_e) * tile_e
    eidx = jnp.pad(edge_index, ((0, 0), (0, e_pad - E)))  # padded edges -> node 0

    # Gather + add endpoint features in transposed (C, E_pad) layout so the
    # kernel sees edges on the lane axis. Only one (C, E_pad) array hits HBM.
    # TODO(synk): an in-kernel SMEM-indexed gather (z resident in VMEM) would
    # cut HBM traffic further; left as fused XLA glue here.
    zt = z.astype(jnp.float32).T                   # (C, N)
    zsum_t = zt[:, eidx[0]] + zt[:, eidx[1]]       # (C, E_pad)

    w_col = weight.astype(jnp.float32).reshape(C, 1)   # (C, 1)
    b_smem = bias.astype(jnp.float32).reshape(1, 1)    # (1, 1) scalar -> SMEM

    grid = (e_pad // tile_e,)
    kernel = functools.partial(_decoder_kernel, apply_sigmoid=bool(sigmoid))

    out_row = pl.pallas_call(
        kernel,
        out_shape=jax.ShapeDtypeStruct((1, e_pad), jnp.float32),
        grid=grid,
        in_specs=[
            pl.BlockSpec((C, tile_e), lambda i: (0, i)),          # zsum tile
            pl.BlockSpec((C, 1), lambda i: (0, 0)),               # weight column
            pl.BlockSpec(memory_space=pltpu.MemorySpace.SMEM),    # scalar bias
        ],
        out_specs=pl.BlockSpec((1, tile_e), lambda i: (0, i)),
        compiler_params=pltpu.CompilerParams(
            dimension_semantics=("parallel",)),
    )(zsum_t, w_col, b_smem)

    return out_row[0, :E].reshape(E, 1)


def init_params(key, in_channels):
    """nn.Linear(in_channels, 1)-style init: uniform(+/- 1/sqrt(fan_in))."""
    kw, kb = jax.random.split(key)
    bound = 1.0 / jnp.sqrt(in_channels)
    weight = jax.random.uniform(kw, (1, in_channels), jnp.float32, -bound, bound)
    bias = jax.random.uniform(kb, (1,), jnp.float32, -bound, bound)
    return weight, bias


def _reference(z, edge_index, weight, bias, sigmoid=True):
    zsum = z[edge_index[0]] + z[edge_index[1]]
    logits = zsum @ weight.T + bias
    return jax.nn.sigmoid(logits) if sigmoid else logits


if __name__ == "__main__":
    key = jax.random.PRNGKey(0)
    k_z, k_e, k_p = jax.random.split(key, 3)

    N = 16      # number of nodes
    C = 8       # out_channels (feature dim fed to the decoder)
    E = 300     # number of edges (deliberately not a tile multiple)

    z = jax.random.normal(k_z, (N, C), dtype=jnp.float32)
    edge_index = jax.random.randint(k_e, (2, E), 0, N, dtype=jnp.int32)
    weight, bias = init_params(k_p, C)

    # tile_e=128 here just to exercise a multi-step grid at small E;
    # the default (1024) is appropriate for realistic edge counts.
    out = logistic_decoder_forward(z, edge_index, weight, bias,
                                   sigmoid=True, tile_e=128)
    out = jax.block_until_ready(out)

    ref = _reference(z, edge_index, weight, bias, sigmoid=True)
    assert out.shape == (E, 1)
    assert jnp.allclose(out, ref, atol=1e-5, rtol=1e-5)

    # Also check the non-sigmoid path.
    out_ns = jax.block_until_ready(
        logistic_decoder_forward(z, edge_index, weight, bias,
                                 sigmoid=False, tile_e=128))
    ref_ns = _reference(z, edge_index, weight, bias, sigmoid=False)
    assert jnp.allclose(out_ns, ref_ns, atol=1e-5, rtol=1e-5)

    print("KERNEL_OK")
</pallas_src>

<mosaic_0001>
module attributes {stable_mosaic.version = 11 : i64} {
  func.func @_decoder_kernel(%arg0: i32, %arg1: memref<8x128xf32, #tpu.memory_space<vmem>>, %arg2: memref<8x1xf32, #tpu.memory_space<vmem>>, %arg3: memref<1x1xf32, #tpu.memory_space<smem>>, %arg4: memref<1x128xf32, #tpu.memory_space<vmem>>) attributes {dimension_semantics = [#tpu.dimension_semantics<parallel>], iteration_bounds = array<i64: 3>, scalar_prefetch = 0 : i64, scratch_operands = 0 : i64, tpu.core_type = #tpu.core_type<tc>, window_params = [{transform_indices = @transform_0, window_bounds = array<i64: 8, 128>}, {pipeline_mode = #tpu.pipeline_mode<synchronous>, transform_indices = @transform_1, window_bounds = array<i64: 8, 1>}, {transform_indices = @transform_2, window_bounds = array<i64: 1, 1>}, {transform_indices = @transform_3, window_bounds = array<i64: 1, 128>}]} {
    %c0 = arith.constant 0 : index
    %c0_0 = arith.constant 0 : index
    %0 = vector.load %arg1[%c0, %c0_0] : memref<8x128xf32, #tpu.memory_space<vmem>>, vector<8x128xf32>
    %c0_1 = arith.constant 0 : index
    %c0_2 = arith.constant 0 : index
    %1 = vector.load %arg2[%c0_1, %c0_2] : memref<8x1xf32, #tpu.memory_space<vmem>>, vector<8x1xf32>
    %2 = vector.broadcast %1 : vector<8x1xf32> to vector<8x128xf32>
    %3 = arith.mulf %0, %2 : vector<8x128xf32>
    %cst = arith.constant dense<0.000000e+00> : vector<128xf32>
    %4 = vector.multi_reduction <add>, %3, %cst [0] : vector<8x128xf32> to vector<128xf32>
    %5 = vector.shape_cast %4 : vector<128xf32> to vector<1x128xf32>
    %c0_3 = arith.constant 0 : index
    %c0_4 = arith.constant 0 : index
    %6 = memref.load %arg3[%c0_3, %c0_4] : memref<1x1xf32, #tpu.memory_space<smem>>
    %7 = vector.broadcast %6 : f32 to vector<1x128xf32>
    %8 = arith.addf %5, %7 : vector<1x128xf32>
    %9 = arith.negf %8 : vector<1x128xf32>
    %10 = math.exp %9 : vector<1x128xf32>
    %cst_5 = arith.constant 1.000000e+00 : f32
    %11 = vector.broadcast %cst_5 : f32 to vector<1x128xf32>
    %12 = arith.addf %11, %10 : vector<1x128xf32>
    %13 = arith.divf %11, %12 : vector<1x128xf32>
    %c0_6 = arith.constant 0 : index
    %c0_7 = arith.constant 0 : index
    %14 = vector.load %arg4[%c0_6, %c0_7] : memref<1x128xf32, #tpu.memory_space<vmem>>, vector<1x128xf32>
    tpu.vector_store %arg4[%c0_6, %c0_7], %13 {strides = array<i32>} : memref<1x128xf32, #tpu.memory_space<vmem>>, vector<1x128xf32>,
    return
  }
  func.func @transform_0(%arg0: i32) -> (i32, i32) {
    %c0_i32 = arith.constant 0 : i32
    %c0_i32_0 = arith.constant 0 : i32
    return %c0_i32, %arg0 : i32, i32
  }
  func.func @transform_1(%arg0: i32) -> (i32, i32) {
    %c0_i32 = arith.constant 0 : i32
    %c0_i32_0 = arith.constant 0 : i32
    %c0_i32_1 = arith.constant 0 : i32
    return %c0_i32, %c0_i32_0 : i32, i32
  }
  func.func @transform_2(%arg0: i32) -> (i32, i32) {
    %c0_i32 = arith.constant 0 : i32
    %c0_i32_0 = arith.constant 0 : i32
    %c0_i32_1 = arith.constant 0 : i32
    return %c0_i32, %c0_i32_0 : i32, i32
  }
  func.func @transform_3(%arg0: i32) -> (i32, i32) {
    %c0_i32 = arith.constant 0 : i32
    %c0_i32_0 = arith.constant 0 : i32
    return %c0_i32, %arg0 : i32, i32
  }
}

</mosaic_0001>

<bundles_post_ra>
// kernel: tpu_custom_call.1
= control target key start
LH: loop header
LB: loop body
LE: loop exit
PB: predicated region body
PF: predicated region fallthrough
CT: control target
= control target key end

     0   :  { %s621_s0 = inlined_call_operand.hbm [shape: f32[8,384], index: 0, kind: input, shape index: {}]   ;;  %s622_s1 = inlined_call_operand.vmem [shape: f32[8,1], index: 1, kind: input, shape index: {}]   ;;  %s623_s2 = inlined_call_operand.<no memory space> [shape: f32[1,1], index: 2, kind: input, shape index: {}]   ;;  %s624_s3 = inlined_call_operand.hbm [shape: f32[1,384], index: 3, kind: output, shape index: {}]  }
   0x1   :  { %8 = sst [smem:[#allocation2]] %s623_s2 }
   0x2   :  { %9 = vsyncpa [#allocation4], 0 }
   0x3   :  { %11 = vsyncpa [#allocation4 + $0x1], 0 }
   0x4   :  { %12 = vsyncpa [#allocation5], 0 }
   0x5   :  { %14 = vsyncpa [#allocation5 + $0x1], 0  ;;  %s472_s14 = smov 0   ;;  %s474_s15 = smov 0  }
   0x6   :  { %s476_s16 = smov 0   ;;  %s478_s17 = smov 0  }
   0x7 LB: > { %s493_s2 = sadd.s32 4294967295, %s444_s17   ;;  %s289_s18 = sadd.s32 4294967294, %s444_s17   ;;  %s444_s17 = sphi %s478_s17, %s640_s17   ;;  %s440_s16 = sphi %s476_s16, %s639_s16   ;;  %s436_s15 = sphi %s474_s15, %s638_s15   ;;  %s432_s14 = sphi %s472_s14, %s637_s14  }
   0x8   : > { %s497_s19 = sadd.s32 1, %s444_s17   ;;  %s27_s20 = sadd.s32 1, %s440_s16 }
   0x9   : > { %s24_s21 = ssub.s32 %s444_s17, %s497_s19  ;;  %p34_p0 = scmp.ne.s32.totalorder %s440_s16, %s436_s15 }
   0xa   : > { %p25_p1 = scmp.eq.s32.totalorder %s24_s21, 0  ;;  %p35_p2 = scmp.eq.s32.totalorder %s444_s17, 0 }
   0xb   : > { %p40_p3 = scmp.ne.s32.totalorder %s436_s15, %s432_s14  ;;  %p41_p4 = scmp.eq.s32.totalorder %s493_s2, 0 }
   0xc   : > { %s509_s22 = scalar_select %p25_p1, %s440_s16, %s27_s20  }
   0xd   : > { %p511_p5 = por %p35_p2, %p34_p0  ;;  %p515_p6 = por %p41_p4, %p40_p3 }
   0xe   : > { %p106_p7 = scmp.eq.s32.totalorder %s493_s2, 2  ;;  %p112_p8 = scmp.eq.s32.totalorder %s289_s18, 2 }
   0xf   : > { %s628_s24 = scalar_select %p515_p6, 1, 0 }
  0x10   : > { %p312_p9 = scmp.lt.s32.totalorder %s444_s17, 3  ;;  %p521_p10 = por %p106_p7, %p34_p0 }
  0x11   : > { %p525_p11 = por %p112_p8, %p40_p3  ;;  %s138_s27 = sand.u32 1, %s440_s16  }
  0x12   : > { %s629_s25 = scalar_select %p521_p10, 1, 0 }
  0x13   : > { %s630_s26 = scalar_select %p525_p11, 1, 0 }
  0x14   : > { %s293_s28 = sshll.u32 %s444_s17, 7  ;;  %s292_s29 = sshll.u32 %s138_s27, 3 }
  0x15   : > { %s534_s5 = scalar_lea.hbm %s621_s0, %s293_s28  ;;  %s142_s6 = scalar_lea.vmem [#allocation3], %s292_s29 }
  0x16   : > { %s149_s7 = sshll.u32 %s142_s6, 4  ;;  %p538_p12 = pnand %p312_p9, %p511_p5  ;;  %s542_s7 = int_to_ptr.vmem [resolvable:$true] %s149_s7 }
  0x17   : > { %s139_s9 = scalar_lea.sflag [#allocation4], %s138_s27  ;;  %s352_s10 = scalar_lea.hbm %s534_s5, 128 }
  0x18   : > { %p353_p1 = scmp.ne.s32.totalorder %s534_s5, %s352_s10  ;;  %p354_p2 = pneg %p538_p12 }
  0x19   : > { %s357_s13 = scalar_lea.hbm %s621_s0, 384  ;;  %p358_p5 = scmp.lt.s32.totalorder %s534_s5, %s621_s0 }
  0x1a   : > { %p355_p3 = pnand %p354_p2, %p353_p1  ;;  %p359_p7 = scmp.lt.s32.totalorder %s357_s13, %s352_s10 }
  0x1c   : > { %p356_p4 = pneg %p355_p3  ;;  %p360_p8 = por %p359_p7, %p358_p5 }
  0x1e   : > { %p361_p9 = pnand %p360_p8, %p356_p4 }
  0x20   : > { %364 = shalt.err (!%p361_p9)
}
  0x21   : > { %s365_s21 = scalar_lea.vmem %s542_s7, 128  ;;  %s446_s23 = smov [#allocation3]  }
  0x22   : > { %p366_p13 = scmp.ne.s32.totalorder %s542_s7, %s365_s21  ;;  %s370_s27 = sshll.u32 %s446_s23, 4  ;;  %s371_s27 = int_to_ptr.vmem [resolvable:$false] %s370_s27 }
  0x23   : > { %s372_s28 = scalar_lea.vmem %s371_s27, 256  ;;  %p373_p3 = scmp.lt.s32.totalorder %s542_s7, %s371_s27 }
  0x24   : > { %p368_p0 = pnand %p366_p13, %p354_p2  ;;  %p374_p11 = scmp.lt.s32.totalorder %s372_s28, %s365_s21 }
  0x26   : > { %p369_p1 = pneg %p368_p0  ;;  %p375_p10 = por %p374_p11, %p373_p3 }
  0x28   : > { %p376_p6 = pnand %p375_p10, %p369_p1 }
  0x2a   : > { %379 = shalt.err (!%p376_p6)
}
  0x2b   : > { %307 = dma.hbm_to_vmem [thread:$0]  (!%p538_p12), %s534_s5, 128, %s542_s7, %s139_s9  }
  0x2c   : > { %p632_p4 = scmp.lt.s32.totalorder %s444_s17, 4  ;;  %p633_p5 = scmp.ge.s32.totalorder %s444_s17, 1 }
  0x2e   : > { %p155_p13 = pnand %p633_p5, %p632_p4 }
  0x2f   : > { %s569_s29 = sand.u32 (!%p155_p13), 1, %s436_s15   ;;  %p634_p6 = scmp.ne.s32.totalorder (!%p155_p13), %s628_s24, 0 }
  0x30   : > { %158 = sbr.rel (%p155_p13) target bundleno = 241 (0xf1), region = 32  ;;  %s295_s30 = sshll.u32 (!%p155_p13), %s569_s29, 3 }
  0x31   : > { %s161_s4 = scalar_lea.sflag (!%p155_p13), [#allocation4], %s569_s29  ;;  %s164_s6 = scalar_lea.vmem (!%p155_p13), [#allocation3], %s295_s30 }
  0x35   : > { %423 = dma.done.wait (%p634_p6), %s161_s4, 128  }
  0x36   : > { %425 = vsyncadd (%p634_p6), %s161_s4, 4294967168  ;;  %v447_v0 = vmov 0   ;;  %v187_v1 = vld [vmem:[%s622_s1] sm:$0xff]  ;;  %s200_s8 = sld [smem:[#allocation2]]  ;;  %s297_s24 = sshll.u32 %s493_s2, 4 }
  0x37   : > { %347 = vset.pattern.permute.xlu0 %v447_v0  ;;  %v186_v2 = vld [vmem:[%s164_s6] sm:$0xff]  ;;  %s185_s9 = scalar_lea.vmem [#allocation6], %s569_s29  ;;  %s585_s13 = scalar_lea.hbm %s624_s3, %s297_s24 }
  0x38   : > { %190 = vperm.xlu0 %347, %v187_v1   ;;  %s223_s10 = sshll.u32 %s185_s9, 4  ;;  %s211_s18 = scalar_lea.sflag [#allocation5], %s569_s29  ;;  %s224_s10 = int_to_ptr.vmem [resolvable:$true] %s223_s10 }
  0x39   : > { %s380_s20 = scalar_lea.vmem %s224_s10, 16  ;;  %p635_p11 = scmp.ne.s32.totalorder %s629_s25, 0 }
  0x3a   : > { %p381_p10 = scmp.ne.s32.totalorder %s224_s10, %s380_s20  ;;  %s448_s21 = smov [#allocation6]  }
  0x3b   : > { %s384_s23 = sshll.u32 %s448_s21, 4  ;;  %s385_s23 = int_to_ptr.vmem [resolvable:$false] %s384_s23 }
  0x3c   : > { %v201_v10 = vstv %s200_s8  ;;  %p382_p12 = pnand %p381_p10, %p635_p11  ;;  %s386_s2 = scalar_lea.vmem %s385_s23, 32 }
  0x3d   : > { %p387_p2 = scmp.lt.s32.totalorder %s224_s10, %s385_s23  ;;  %p388_p7 = scmp.lt.s32.totalorder %s386_s2, %s380_s20 }
  0x3e   : > { %p383_p0 = pneg %p382_p12 }
  0x3f   : > { %p389_p8 = por %p388_p7, %p387_p2 }
  0x41   : > { %p390_p9 = pnand %p389_p8, %p383_p0 }
  0xb3   : > { %v191_v3 = vpop.permute.xlu0 %190 }
  0xb4   : > { %v193_v4 = vmul.f32 %v191_v3, %v186_v2 }
  0xb6   : > { %v194_v5 = vrot.slane %v193_v4, 4 }
  0xb8   : > { %v195_v6 = vadd.f32 %v194_v5, %v193_v4 }
  0xba   : > { %v196_v7 = vrot.slane %v195_v6, 2 }
  0xbc   : > { %v197_v8 = vadd.f32 %v196_v7, %v195_v6 }
  0xbe   : > { %v198_v9 = vrot.slane %v197_v8, 1 }
  0xc0   : > { %v199_v11 = vadd.f32 %v198_v9, %v197_v8 }
  0xc2   : > { %v202_v12 = vadd.f32 %v201_v10, %v199_v11 }
  0xc4   : > { %v296_v13 = vmul.f32 -1.442695, %v202_v12 }
  0xc6   : > { %348 = vpow2.f32 %v296_v13 }
  0xd3   : > { %v349_v14 = vpop.eup %348 }
  0xd4   : > { %v206_v15 = vadd.f32 1.0, %v349_v14 }
  0xd6   : > { %350 = vrcp.f32 %v206_v15 }
  0xe3   : > { %v351_v16 = vpop.eup %350 }
  0xe4   : > { %209 = vst [vmem:[%s185_s9] sm:$0x1] %v351_v16 }
  0xe5   : > { %393 = shalt.err (!%p390_p9)
}
  0xe6   : > { %s394_s27 = scalar_lea.hbm %s585_s13, 16  ;;  %s398_s30 = scalar_lea.hbm %s624_s3, 48 }
  0xe7   : > { %p395_p1 = scmp.ne.s32.totalorder %s585_s13, %s394_s27  ;;  %p399_p5 = scmp.lt.s32.totalorder %s585_s13, %s624_s3 }
  0xe8   : > { %p400_p13 = scmp.lt.s32.totalorder %s398_s30, %s394_s27 }
  0xe9   : > { %p396_p3 = pnand %p395_p1, %p635_p11 }
  0xea   : > { %p401_p6 = por %p400_p13, %p399_p5 }
  0xeb   : > { %p397_p4 = pneg %p396_p3 }
  0xed   : > { %p402_p10 = pnand %p401_p6, %p397_p4 }
  0xef   : > { %405 = shalt.err (!%p402_p10)
}
  0xf0   : > { %302 = dma.vmem_to_hbm [thread:$0]  (%p635_p11), %s224_s10, 16, %s585_s13, %s211_s18  }
  0xf1 PF: > { %p313_p12 = scmp.ge.s32.totalorder %s444_s17, 2  ;;  %s235_s5 = sand.u32 1, %s432_s14  }
  0xf2   : > { %p636_p0 = scmp.ne.s32.totalorder %s630_s26, 0  ;;  %s236_s7 = scalar_lea.sflag [#allocation5], %s235_s5 }
  0xf4   : > { %p309_p2 = pnand %p313_p12, %p636_p0 }
  0xf6   : > { %p310_p7 = pneg %p309_p2 }
  0xf8   : > { %427 = dma.done.wait (%p310_p7), %s236_s7, 16  }
  0xf9   : > { %429 = vsyncadd (%p310_p7), %s236_s7, 4294967280  ;;  %p17_p8 = scmp.ge.s32.totalorder %s497_s19, 5   ;;  %s637_s14 = smov %s436_s15 }
  0xfa   : > { %s638_s15 = smov %s440_s16  ;;  %s639_s16 = smov %s509_s22 }
  0xfb   : > { %s640_s17 = smov %s497_s19  ;;  %19 = sbr.rel (!%p17_p8) target bundleno = 7 (0x7), region = 77 }
 0x100   :  { %240 = vsyncpa [#allocation4], 1 }
 0x101   :  { %242 = vsyncpa [#allocation4 + $0x1], 1 }
 0x102   :  { %243 = vsyncpa [#allocation5], 1 }
 0x103   :  { %245 = vsyncpa [#allocation5 + $0x1], 1 }

</bundles_post_ra>
